<compile_context>
chip_gen: v7x
topology: tpu7x:2x2x1
jax: 0.10.0
libtpu: 0.0.40
codegen_flags: <defaults>
</compile_context>

<pallas_src>
import math

import jax
import jax.numpy as jnp
from jax import lax
from jax.experimental import pallas as pl
from jax.experimental.pallas import tpu as pltpu

# ---- problem sizes (small, consistent with the module) ----
SEQ_LEN = 8
EMBED_DIM = 32
N_HEADS = 4
HEAD_DIM = EMBED_DIM // N_HEADS
BATCH = 4


def _mha_kernel(x_ref, wqkv_ref, bqkv_ref, wo_ref, bo_ref, out_ref, attn_ref):
    """One sequence per grid step.

    x_ref:    [S, E]            (batch dim squeezed by BlockSpec)
    wqkv_ref: [E, 3E]  bqkv_ref: [1, 3E]   (pre-packed, pre-transposed,
                                            Q part pre-scaled by 1/sqrt(E))
    wo_ref:   [E, E]   bo_ref:   [1, E]    (pre-transposed)
    out_ref:  [S, E]
    attn_ref: [S, H*S]  lane-dense slab; heads along the lane axis.
    """
    x = x_ref[...]                                                    # [S, E] f32

    # Fused Q/K/V projection: one MXU op, [S, 3E] result.  The Q third of the
    # packed weight/bias already carries the 1/sqrt(EMBED_DIM) scaling.
    qkv = (jnp.dot(x, wqkv_ref[...], preferred_element_type=jnp.float32)
           + bqkv_ref[...])                                           # [S, 3E]

    wo_t = wo_ref[...]                                                # [E, E]

    # Init accumulator with the output bias (broadcast hoisted out of the loop).
    out_acc = jnp.broadcast_to(bo_ref[...], (SEQ_LEN, EMBED_DIM)).astype(jnp.float32)

    for h in range(N_HEADS):                  # static unroll over heads
        lo = h * HEAD_DIM
        qh = qkv[:, lo:lo + HEAD_DIM]                                 # [S, D] (pre-scaled)
        kh = qkv[:, EMBED_DIM + lo:EMBED_DIM + lo + HEAD_DIM]         # [S, D]
        vh = qkv[:, 2 * EMBED_DIM + lo:2 * EMBED_DIM + lo + HEAD_DIM]  # [S, D]

        # q @ k^T without materializing a transposed tile.
        s = lax.dot_general(qh, kh, (((1,), (1,)), ((), ())),
                            preferred_element_type=jnp.float32)       # [S, S]

        # Softmax over the key axis.
        m = jnp.max(s, axis=-1, keepdims=True)
        e = jnp.exp(s - m)
        denom = jnp.sum(e, axis=-1, keepdims=True)
        # approx=True would move this fully onto the EUP approx path; kept
        # exact so the tight numerical check against the reference holds.
        a = e * pl.reciprocal(denom, approx=False)                    # [S, S]

        # Lane-dense attention store: all heads land in one (S, H*S) slab.
        attn_ref[:, h * SEQ_LEN:(h + 1) * SEQ_LEN] = a

        # Fold the output projection into the head loop: no concat needed.
        ctx_h = jnp.dot(a, vh, preferred_element_type=jnp.float32)    # [S, D]
        out_acc = out_acc + jnp.dot(ctx_h, wo_t[lo:lo + HEAD_DIM, :],
                                    preferred_element_type=jnp.float32)

    out_ref[...] = out_acc


def pack_params(params):
    """One-time parameter prep (hoisted out of the per-call path).

    Input: torch-Linear layout weights [out, in] and biases [out].
    Output: pre-transposed / pre-packed f32 operands for the kernel.  The Q
    weight/bias are pre-scaled by 1/sqrt(EMBED_DIM) so the kernel never has
    to multiply scores by the softmax scale.
    """
    scale = 1.0 / math.sqrt(EMBED_DIM)        # matches ScaledDotProductAttention
    wqkv_t = jnp.concatenate(
        [params["wq"].T * scale, params["wk"].T, params["wv"].T], axis=1)  # [E, 3E]
    bqkv = jnp.concatenate(
        [params["bq"] * scale, params["bk"], params["bv"]])[None, :]       # [1, 3E]
    return dict(
        wqkv_t=wqkv_t.astype(jnp.float32),
        bqkv=bqkv.astype(jnp.float32),
        wo_t=params["wo"].T.astype(jnp.float32),                           # [E, E]
        bo=params["bo"][None, :].astype(jnp.float32),                      # [1, E]
    )


@jax.jit
def multi_head_attention_batched(x, packed):
    """x: [B, S, E] f32. Returns (out [B, S, E], attn [B, H, S, S])."""
    b, s, e = x.shape
    assert s == SEQ_LEN and e == EMBED_DIM

    out, attn_slab = pl.pallas_call(
        _mha_kernel,
        out_shape=(
            jax.ShapeDtypeStruct((b, SEQ_LEN, EMBED_DIM), jnp.float32),
            jax.ShapeDtypeStruct((b, SEQ_LEN, N_HEADS * SEQ_LEN), jnp.float32),
        ),
        grid_spec=pltpu.PrefetchScalarGridSpec(
            num_scalar_prefetch=0,
            grid=(b,),
            in_specs=[
                pl.BlockSpec((None, SEQ_LEN, EMBED_DIM), lambda i: (i, 0, 0)),
                pl.BlockSpec((EMBED_DIM, 3 * EMBED_DIM), lambda i: (0, 0)),
                pl.BlockSpec((1, 3 * EMBED_DIM), lambda i: (0, 0)),
                pl.BlockSpec((EMBED_DIM, EMBED_DIM), lambda i: (0, 0)),
                pl.BlockSpec((1, EMBED_DIM), lambda i: (0, 0)),
            ],
            out_specs=(
                pl.BlockSpec((None, SEQ_LEN, EMBED_DIM), lambda i: (i, 0, 0)),
                pl.BlockSpec((None, SEQ_LEN, N_HEADS * SEQ_LEN), lambda i: (i, 0, 0)),
            ),
        ),
        compiler_params=pltpu.CompilerParams(
            dimension_semantics=("parallel",)),
    )(x.astype(jnp.float32), packed["wqkv_t"], packed["bqkv"],
      packed["wo_t"], packed["bo"])

    # Lane-dense slab -> [B, H, S, S] view expected by the module.
    attn = attn_slab.reshape(b, SEQ_LEN, N_HEADS, SEQ_LEN).transpose(0, 2, 1, 3)
    return out, attn


def multi_head_attention(x, packed):
    """Single-sequence entry matching the PyTorch module: x [S, E] ->
    (output [S, E], attn [H, S, S])."""
    out, attn = multi_head_attention_batched(x[None], packed)
    return out[0], attn[0]


def _reference(x, params):
    """Pure-JAX mirror of the PyTorch forward (one sequence) for verification."""
    def linear(v, w, bias):
        return v @ w.T + bias

    q = linear(x, params["wq"], params["bq"])
    k = linear(x, params["wk"], params["bk"])
    v = linear(x, params["wv"], params["bv"])
    qh = q.reshape(SEQ_LEN, N_HEADS, HEAD_DIM).transpose(1, 0, 2)
    kh = k.reshape(SEQ_LEN, N_HEADS, HEAD_DIM).transpose(1, 0, 2)
    vh = v.reshape(SEQ_LEN, N_HEADS, HEAD_DIM).transpose(1, 0, 2)
    scores = jnp.einsum("hqd,hkd->hqk", qh, kh) / math.sqrt(EMBED_DIM)
    attn = jax.nn.softmax(scores, axis=-1)
    ctx = jnp.einsum("hqk,hkd->hqd", attn, vh)
    ctx = ctx.transpose(1, 0, 2).reshape(SEQ_LEN, EMBED_DIM)
    out = linear(ctx, params["wo"], params["bo"])
    return out, attn


if __name__ == "__main__":
    key = jax.random.PRNGKey(0)
    keys = jax.random.split(key, 10)

    def init_linear(kw, kb):
        bound = 1.0 / math.sqrt(EMBED_DIM)
        w = jax.random.uniform(kw, (EMBED_DIM, EMBED_DIM), jnp.float32, -bound, bound)
        bias = jax.random.uniform(kb, (EMBED_DIM,), jnp.float32, -bound, bound)
        return w, bias

    wq, bq = init_linear(keys[0], keys[1])
    wk, bk = init_linear(keys[2], keys[3])
    wv, bv = init_linear(keys[4], keys[5])
    wo, bo = init_linear(keys[6], keys[7])
    params = dict(wq=wq, bq=bq, wk=wk, bk=bk, wv=wv, bv=bv, wo=wo, bo=bo)

    # One-time parameter packing (weights pre-transposed / QKV fused / Q scaled).
    packed = pack_params(params)

    x = jax.random.normal(keys[8], (BATCH, SEQ_LEN, EMBED_DIM), jnp.float32)

    # Batched kernel call (grid over batch).
    out, attn = multi_head_attention_batched(x, packed)
    out, attn = jax.block_until_ready((out, attn))

    # Verify against the pure-JAX mirror of the PyTorch forward, per sequence.
    ref_out, ref_attn = jax.vmap(lambda xb: _reference(xb, params))(x)
    assert out.shape == (BATCH, SEQ_LEN, EMBED_DIM)
    assert attn.shape == (BATCH, N_HEADS, SEQ_LEN, SEQ_LEN)
    assert jnp.allclose(out, ref_out, atol=1e-4, rtol=1e-4)
    assert jnp.allclose(attn, ref_attn, atol=1e-4, rtol=1e-4)

    # Single-sequence entry (exact module signature) also checks out.
    out1, attn1 = multi_head_attention(x[0], packed)
    ref_out1, ref_attn1 = _reference(x[0], params)
    assert jnp.allclose(out1, ref_out1, atol=1e-4, rtol=1e-4)
    assert jnp.allclose(attn1, ref_attn1, atol=1e-4, rtol=1e-4)

    print("KERNEL_OK")
</pallas_src>

<mosaic_0001>
module attributes {stable_mosaic.version = 11 : i64} {
  func.func @_mha_kernel(%arg0: i32, %arg1: memref<1x8x32xf32, #tpu.memory_space<vmem>>, %arg2: memref<32x96xf32, #tpu.memory_space<vmem>>, %arg3: memref<1x96xf32, #tpu.memory_space<vmem>>, %arg4: memref<32x32xf32, #tpu.memory_space<vmem>>, %arg5: memref<1x32xf32, #tpu.memory_space<vmem>>, %arg6: memref<1x8x32xf32, #tpu.memory_space<vmem>>, %arg7: memref<1x8x32xf32, #tpu.memory_space<vmem>>) attributes {dimension_semantics = [#tpu.dimension_semantics<parallel>], iteration_bounds = array<i64: 4>, scalar_prefetch = 0 : i64, scratch_operands = 0 : i64, tpu.core_type = #tpu.core_type<tc>, window_params = [{transform_indices = @transform_0, window_bounds = array<i64: 1, 8, 32>}, {pipeline_mode = #tpu.pipeline_mode<synchronous>, transform_indices = @transform_1, window_bounds = array<i64: 32, 96>}, {pipeline_mode = #tpu.pipeline_mode<synchronous>, transform_indices = @transform_2, window_bounds = array<i64: 1, 96>}, {pipeline_mode = #tpu.pipeline_mode<synchronous>, transform_indices = @transform_3, window_bounds = array<i64: 32, 32>}, {pipeline_mode = #tpu.pipeline_mode<synchronous>, transform_indices = @transform_4, window_bounds = array<i64: 1, 32>}, {transform_indices = @transform_5, window_bounds = array<i64: 1, 8, 32>}, {transform_indices = @transform_6, window_bounds = array<i64: 1, 8, 32>}]} {
    %c0 = arith.constant 0 : index
    %c0_0 = arith.constant 0 : index
    %c0_1 = arith.constant 0 : index
    %0 = vector.load %arg1[%c0, %c0_0, %c0_1] : memref<1x8x32xf32, #tpu.memory_space<vmem>>, vector<1x8x32xf32>
    %1 = vector.shape_cast %0 : vector<1x8x32xf32> to vector<8x32xf32>
    %c0_2 = arith.constant 0 : index
    %c0_3 = arith.constant 0 : index
    %2 = vector.load %arg2[%c0_2, %c0_3] : memref<32x96xf32, #tpu.memory_space<vmem>>, vector<32x96xf32>
    %cst = arith.constant dense<0.000000e+00> : vector<8x96xf32>
    %3 = tpu.matmul %1, %2, %cst {dimension_numbers = #tpu.dot_dimension_numbers<[1], [0], [0], [1], [0, 0, 1, 1], [], []>} : vector<8x32xf32>, vector<32x96xf32>, vector<8x96xf32> -> vector<8x96xf32>
    %c0_4 = arith.constant 0 : index
    %c0_5 = arith.constant 0 : index
    %4 = vector.load %arg3[%c0_4, %c0_5] : memref<1x96xf32, #tpu.memory_space<vmem>>, vector<1x96xf32>
    %5 = vector.broadcast %4 : vector<1x96xf32> to vector<8x96xf32>
    %6 = arith.addf %3, %5 : vector<8x96xf32>
    %c0_6 = arith.constant 0 : index
    %c0_7 = arith.constant 0 : index
    %7 = vector.load %arg4[%c0_6, %c0_7] : memref<32x32xf32, #tpu.memory_space<vmem>>, vector<32x32xf32>
    %c0_8 = arith.constant 0 : index
    %c0_9 = arith.constant 0 : index
    %8 = vector.load %arg5[%c0_8, %c0_9] : memref<1x32xf32, #tpu.memory_space<vmem>>, vector<1x32xf32>
    %9 = vector.shape_cast %8 : vector<1x32xf32> to vector<1x32xf32>
    %10 = vector.broadcast %9 : vector<1x32xf32> to vector<8x32xf32>
    %11 = vector.extract_strided_slice %6 {offsets = [0, 0], sizes = [8, 8], strides = [1, 1]} : vector<8x96xf32> to vector<8x8xf32>
    %12 = vector.extract_strided_slice %6 {offsets = [0, 32], sizes = [8, 8], strides = [1, 1]} : vector<8x96xf32> to vector<8x8xf32>
    %13 = vector.extract_strided_slice %6 {offsets = [0, 64], sizes = [8, 8], strides = [1, 1]} : vector<8x96xf32> to vector<8x8xf32>
    %cst_10 = arith.constant dense<0.000000e+00> : vector<8x8xf32>
    %14 = tpu.matmul %11, %12, %cst_10 {dimension_numbers = #tpu.dot_dimension_numbers<[1], [1], [0], [0], [0, 0, 1, 0], [], []>} : vector<8x8xf32>, vector<8x8xf32>, vector<8x8xf32> -> vector<8x8xf32>
    %cst_11 = arith.constant dense<0xFF800000> : vector<8xf32>
    %15 = vector.multi_reduction <maximumf>, %14, %cst_11 [1] : vector<8x8xf32> to vector<8xf32>
    %16 = vector.shape_cast %15 : vector<8xf32> to vector<8x1xf32>
    %17 = vector.broadcast %16 : vector<8x1xf32> to vector<8x8xf32>
    %18 = arith.subf %14, %17 : vector<8x8xf32>
    %19 = math.exp %18 : vector<8x8xf32>
    %cst_12 = arith.constant dense<0.000000e+00> : vector<8xf32>
    %20 = vector.multi_reduction <add>, %19, %cst_12 [1] : vector<8x8xf32> to vector<8xf32>
    %21 = vector.shape_cast %20 : vector<8xf32> to vector<8x1xf32>
    %22 = tpu.reciprocal %21 : vector<8x1xf32> -> vector<8x1xf32>
    %23 = vector.broadcast %22 : vector<8x1xf32> to vector<8x8xf32>
    %24 = arith.mulf %19, %23 : vector<8x8xf32>
    %c0_13 = arith.constant 0 : index
    %c0_14 = arith.constant 0 : index
    %c0_15 = arith.constant 0 : index
    %25 = vector.load %arg7[%c0_13, %c0_14, %c0_15] : memref<1x8x32xf32, #tpu.memory_space<vmem>>, vector<1x8x8xf32>
    %26 = vector.shape_cast %25 : vector<1x8x8xf32> to vector<8x8xf32>
    %27 = vector.shape_cast %24 : vector<8x8xf32> to vector<1x8x8xf32>
    tpu.vector_store %arg7[%c0_13, %c0_14, %c0_15], %27 {strides = array<i32>} : memref<1x8x32xf32, #tpu.memory_space<vmem>>, vector<1x8x8xf32>,
    %cst_16 = arith.constant dense<0.000000e+00> : vector<8x8xf32>
    %28 = tpu.matmul %24, %13, %cst_16 {dimension_numbers = #tpu.dot_dimension_numbers<[1], [0], [0], [1], [0, 0, 1, 1], [], []>} : vector<8x8xf32>, vector<8x8xf32>, vector<8x8xf32> -> vector<8x8xf32>
    %29 = vector.extract_strided_slice %7 {offsets = [0, 0], sizes = [8, 32], strides = [1, 1]} : vector<32x32xf32> to vector<8x32xf32>
    %cst_17 = arith.constant dense<0.000000e+00> : vector<8x32xf32>
    %30 = tpu.matmul %28, %29, %cst_17 {dimension_numbers = #tpu.dot_dimension_numbers<[1], [0], [0], [1], [0, 0, 1, 1], [], []>} : vector<8x8xf32>, vector<8x32xf32>, vector<8x32xf32> -> vector<8x32xf32>
    %31 = arith.addf %10, %30 : vector<8x32xf32>
    %32 = vector.extract_strided_slice %6 {offsets = [0, 8], sizes = [8, 8], strides = [1, 1]} : vector<8x96xf32> to vector<8x8xf32>
    %33 = vector.extract_strided_slice %6 {offsets = [0, 40], sizes = [8, 8], strides = [1, 1]} : vector<8x96xf32> to vector<8x8xf32>
    %34 = vector.extract_strided_slice %6 {offsets = [0, 72], sizes = [8, 8], strides = [1, 1]} : vector<8x96xf32> to vector<8x8xf32>
    %cst_18 = arith.constant dense<0.000000e+00> : vector<8x8xf32>
    %35 = tpu.matmul %32, %33, %cst_18 {dimension_numbers = #tpu.dot_dimension_numbers<[1], [1], [0], [0], [0, 0, 1, 0], [], []>} : vector<8x8xf32>, vector<8x8xf32>, vector<8x8xf32> -> vector<8x8xf32>
    %cst_19 = arith.constant dense<0xFF800000> : vector<8xf32>
    %36 = vector.multi_reduction <maximumf>, %35, %cst_19 [1] : vector<8x8xf32> to vector<8xf32>
    %37 = vector.shape_cast %36 : vector<8xf32> to vector<8x1xf32>
    %38 = vector.broadcast %37 : vector<8x1xf32> to vector<8x8xf32>
    %39 = arith.subf %35, %38 : vector<8x8xf32>
    %40 = math.exp %39 : vector<8x8xf32>
    %cst_20 = arith.constant dense<0.000000e+00> : vector<8xf32>
    %41 = vector.multi_reduction <add>, %40, %cst_20 [1] : vector<8x8xf32> to vector<8xf32>
    %42 = vector.shape_cast %41 : vector<8xf32> to vector<8x1xf32>
    %43 = tpu.reciprocal %42 : vector<8x1xf32> -> vector<8x1xf32>
    %44 = vector.broadcast %43 : vector<8x1xf32> to vector<8x8xf32>
    %45 = arith.mulf %40, %44 : vector<8x8xf32>
    %c0_21 = arith.constant 0 : index
    %c0_22 = arith.constant 0 : index
    %c8 = arith.constant 8 : index
    %46 = vector.load %arg7[%c0_21, %c0_22, %c8] : memref<1x8x32xf32, #tpu.memory_space<vmem>>, vector<1x8x8xf32>
    %47 = vector.shape_cast %46 : vector<1x8x8xf32> to vector<8x8xf32>
    %48 = vector.shape_cast %45 : vector<8x8xf32> to vector<1x8x8xf32>
    tpu.vector_store %arg7[%c0_21, %c0_22, %c8], %48 {strides = array<i32>} : memref<1x8x32xf32, #tpu.memory_space<vmem>>, vector<1x8x8xf32>,
    %cst_23 = arith.constant dense<0.000000e+00> : vector<8x8xf32>
    %49 = tpu.matmul %45, %34, %cst_23 {dimension_numbers = #tpu.dot_dimension_numbers<[1], [0], [0], [1], [0, 0, 1, 1], [], []>} : vector<8x8xf32>, vector<8x8xf32>, vector<8x8xf32> -> vector<8x8xf32>
    %50 = vector.extract_strided_slice %7 {offsets = [8, 0], sizes = [8, 32], strides = [1, 1]} : vector<32x32xf32> to vector<8x32xf32>
    %cst_24 = arith.constant dense<0.000000e+00> : vector<8x32xf32>
    %51 = tpu.matmul %49, %50, %cst_24 {dimension_numbers = #tpu.dot_dimension_numbers<[1], [0], [0], [1], [0, 0, 1, 1], [], []>} : vector<8x8xf32>, vector<8x32xf32>, vector<8x32xf32> -> vector<8x32xf32>
    %52 = arith.addf %31, %51 : vector<8x32xf32>
    %53 = vector.extract_strided_slice %6 {offsets = [0, 16], sizes = [8, 8], strides = [1, 1]} : vector<8x96xf32> to vector<8x8xf32>
    %54 = vector.extract_strided_slice %6 {offsets = [0, 48], sizes = [8, 8], strides = [1, 1]} : vector<8x96xf32> to vector<8x8xf32>
    %55 = vector.extract_strided_slice %6 {offsets = [0, 80], sizes = [8, 8], strides = [1, 1]} : vector<8x96xf32> to vector<8x8xf32>
    %cst_25 = arith.constant dense<0.000000e+00> : vector<8x8xf32>
    %56 = tpu.matmul %53, %54, %cst_25 {dimension_numbers = #tpu.dot_dimension_numbers<[1], [1], [0], [0], [0, 0, 1, 0], [], []>} : vector<8x8xf32>, vector<8x8xf32>, vector<8x8xf32> -> vector<8x8xf32>
    %cst_26 = arith.constant dense<0xFF800000> : vector<8xf32>
    %57 = vector.multi_reduction <maximumf>, %56, %cst_26 [1] : vector<8x8xf32> to vector<8xf32>
    %58 = vector.shape_cast %57 : vector<8xf32> to vector<8x1xf32>
    %59 = vector.broadcast %58 : vector<8x1xf32> to vector<8x8xf32>
    %60 = arith.subf %56, %59 : vector<8x8xf32>
    %61 = math.exp %60 : vector<8x8xf32>
    %cst_27 = arith.constant dense<0.000000e+00> : vector<8xf32>
    %62 = vector.multi_reduction <add>, %61, %cst_27 [1] : vector<8x8xf32> to vector<8xf32>
    %63 = vector.shape_cast %62 : vector<8xf32> to vector<8x1xf32>
    %64 = tpu.reciprocal %63 : vector<8x1xf32> -> vector<8x1xf32>
    %65 = vector.broadcast %64 : vector<8x1xf32> to vector<8x8xf32>
    %66 = arith.mulf %61, %65 : vector<8x8xf32>
    %c0_28 = arith.constant 0 : index
    %c0_29 = arith.constant 0 : index
    %c16 = arith.constant 16 : index
    %67 = vector.load %arg7[%c0_28, %c0_29, %c16] : memref<1x8x32xf32, #tpu.memory_space<vmem>>, vector<1x8x8xf32>
    %68 = vector.shape_cast %67 : vector<1x8x8xf32> to vector<8x8xf32>
    %69 = vector.shape_cast %66 : vector<8x8xf32> to vector<1x8x8xf32>
    tpu.vector_store %arg7[%c0_28, %c0_29, %c16], %69 {strides = array<i32>} : memref<1x8x32xf32, #tpu.memory_space<vmem>>, vector<1x8x8xf32>,
    %cst_30 = arith.constant dense<0.000000e+00> : vector<8x8xf32>
    %70 = tpu.matmul %66, %55, %cst_30 {dimension_numbers = #tpu.dot_dimension_numbers<[1], [0], [0], [1], [0, 0, 1, 1], [], []>} : vector<8x8xf32>, vector<8x8xf32>, vector<8x8xf32> -> vector<8x8xf32>
    %71 = vector.extract_strided_slice %7 {offsets = [16, 0], sizes = [8, 32], strides = [1, 1]} : vector<32x32xf32> to vector<8x32xf32>
    %cst_31 = arith.constant dense<0.000000e+00> : vector<8x32xf32>
    %72 = tpu.matmul %70, %71, %cst_31 {dimension_numbers = #tpu.dot_dimension_numbers<[1], [0], [0], [1], [0, 0, 1, 1], [], []>} : vector<8x8xf32>, vector<8x32xf32>, vector<8x32xf32> -> vector<8x32xf32>
    %73 = arith.addf %52, %72 : vector<8x32xf32>
    %74 = vector.extract_strided_slice %6 {offsets = [0, 24], sizes = [8, 8], strides = [1, 1]} : vector<8x96xf32> to vector<8x8xf32>
    %75 = vector.extract_strided_slice %6 {offsets = [0, 56], sizes = [8, 8], strides = [1, 1]} : vector<8x96xf32> to vector<8x8xf32>
    %76 = vector.extract_strided_slice %6 {offsets = [0, 88], sizes = [8, 8], strides = [1, 1]} : vector<8x96xf32> to vector<8x8xf32>
    %cst_32 = arith.constant dense<0.000000e+00> : vector<8x8xf32>
    %77 = tpu.matmul %74, %75, %cst_32 {dimension_numbers = #tpu.dot_dimension_numbers<[1], [1], [0], [0], [0, 0, 1, 0], [], []>} : vector<8x8xf32>, vector<8x8xf32>, vector<8x8xf32> -> vector<8x8xf32>
    %cst_33 = arith.constant dense<0xFF800000> : vector<8xf32>
    %78 = vector.multi_reduction <maximumf>, %77, %cst_33 [1] : vector<8x8xf32> to vector<8xf32>
    %79 = vector.shape_cast %78 : vector<8xf32> to vector<8x1xf32>
    %80 = vector.broadcast %79 : vector<8x1xf32> to vector<8x8xf32>
    %81 = arith.subf %77, %80 : vector<8x8xf32>
    %82 = math.exp %81 : vector<8x8xf32>
    %cst_34 = arith.constant dense<0.000000e+00> : vector<8xf32>
    %83 = vector.multi_reduction <add>, %82, %cst_34 [1] : vector<8x8xf32> to vector<8xf32>
    %84 = vector.shape_cast %83 : vector<8xf32> to vector<8x1xf32>
    %85 = tpu.reciprocal %84 : vector<8x1xf32> -> vector<8x1xf32>
    %86 = vector.broadcast %85 : vector<8x1xf32> to vector<8x8xf32>
    %87 = arith.mulf %82, %86 : vector<8x8xf32>
    %c0_35 = arith.constant 0 : index
    %c0_36 = arith.constant 0 : index
    %c24 = arith.constant 24 : index
    %88 = vector.load %arg7[%c0_35, %c0_36, %c24] : memref<1x8x32xf32, #tpu.memory_space<vmem>>, vector<1x8x8xf32>
    %89 = vector.shape_cast %88 : vector<1x8x8xf32> to vector<8x8xf32>
    %90 = vector.shape_cast %87 : vector<8x8xf32> to vector<1x8x8xf32>
    tpu.vector_store %arg7[%c0_35, %c0_36, %c24], %90 {strides = array<i32>} : memref<1x8x32xf32, #tpu.memory_space<vmem>>, vector<1x8x8xf32>,
    %cst_37 = arith.constant dense<0.000000e+00> : vector<8x8xf32>
    %91 = tpu.matmul %87, %76, %cst_37 {dimension_numbers = #tpu.dot_dimension_numbers<[1], [0], [0], [1], [0, 0, 1, 1], [], []>} : vector<8x8xf32>, vector<8x8xf32>, vector<8x8xf32> -> vector<8x8xf32>
    %92 = vector.extract_strided_slice %7 {offsets = [24, 0], sizes = [8, 32], strides = [1, 1]} : vector<32x32xf32> to vector<8x32xf32>
    %cst_38 = arith.constant dense<0.000000e+00> : vector<8x32xf32>
    %93 = tpu.matmul %91, %92, %cst_38 {dimension_numbers = #tpu.dot_dimension_numbers<[1], [0], [0], [1], [0, 0, 1, 1], [], []>} : vector<8x8xf32>, vector<8x32xf32>, vector<8x32xf32> -> vector<8x32xf32>
    %94 = arith.addf %73, %93 : vector<8x32xf32>
    %c0_39 = arith.constant 0 : index
    %c0_40 = arith.constant 0 : index
    %c0_41 = arith.constant 0 : index
    %95 = vector.load %arg6[%c0_39, %c0_40, %c0_41] : memref<1x8x32xf32, #tpu.memory_space<vmem>>, vector<1x8x32xf32>
    %96 = vector.shape_cast %95 : vector<1x8x32xf32> to vector<8x32xf32>
    %97 = vector.shape_cast %94 : vector<8x32xf32> to vector<1x8x32xf32>
    tpu.vector_store %arg6[%c0_39, %c0_40, %c0_41], %97 {strides = array<i32>} : memref<1x8x32xf32, #tpu.memory_space<vmem>>, vector<1x8x32xf32>,
    return
  }
  func.func @transform_0(%arg0: i32) -> (i32, i32, i32) {
    %c0_i32 = arith.constant 0 : i32
    %c0_i32_0 = arith.constant 0 : i32
    %c0_i32_1 = arith.constant 0 : i32
    return %arg0, %c0_i32, %c0_i32_0 : i32, i32, i32
  }
  func.func @transform_1(%arg0: i32) -> (i32, i32) {
    %c0_i32 = arith.constant 0 : i32
    %c0_i32_0 = arith.constant 0 : i32
    %c0_i32_1 = arith.constant 0 : i32
    return %c0_i32, %c0_i32_0 : i32, i32
  }
  func.func @transform_2(%arg0: i32) -> (i32, i32) {
    %c0_i32 = arith.constant 0 : i32
    %c0_i32_0 = arith.constant 0 : i32
    %c0_i32_1 = arith.constant 0 : i32
    return %c0_i32, %c0_i32_0 : i32, i32
  }
  func.func @transform_3(%arg0: i32) -> (i32, i32) {
    %c0_i32 = arith.constant 0 : i32
    %c0_i32_0 = arith.constant 0 : i32
    %c0_i32_1 = arith.constant 0 : i32
    return %c0_i32, %c0_i32_0 : i32, i32
  }
  func.func @transform_4(%arg0: i32) -> (i32, i32) {
    %c0_i32 = arith.constant 0 : i32
    %c0_i32_0 = arith.constant 0 : i32
    %c0_i32_1 = arith.constant 0 : i32
    return %c0_i32, %c0_i32_0 : i32, i32
  }
  func.func @transform_5(%arg0: i32) -> (i32, i32, i32) {
    %c0_i32 = arith.constant 0 : i32
    %c0_i32_0 = arith.constant 0 : i32
    %c0_i32_1 = arith.constant 0 : i32
    return %arg0, %c0_i32, %c0_i32_0 : i32, i32, i32
  }
  func.func @transform_6(%arg0: i32) -> (i32, i32, i32) {
    %c0_i32 = arith.constant 0 : i32
    %c0_i32_0 = arith.constant 0 : i32
    %c0_i32_1 = arith.constant 0 : i32
    return %arg0, %c0_i32, %c0_i32_0 : i32, i32, i32
  }
}

</mosaic_0001>

<bundles_post_ra>
// kernel: multi_head_attention_batched.1
= control target key start
LH: loop header
LB: loop body
LE: loop exit
PB: predicated region body
PF: predicated region fallthrough
CT: control target
= control target key end

     0   :  { %12 = vsyncpa [#allocation3], 0  ;;  %s2300_s0 = inlined_call_operand.hbm [shape: f32[4,8,32], index: 0, kind: input, shape index: {}]   ;;  %s2301_s1 = inlined_call_operand.hbm [shape: f32[32,96], index: 1, kind: input, shape index: {}]   ;;  %s2302_s2 = inlined_call_operand.vmem [shape: f32[1,96], index: 2, kind: input, shape index: {}]   ;;  %s2303_s3 = inlined_call_operand.hbm [shape: f32[32,32], index: 3, kind: input, shape index: {}]   ;;  %s2304_s4 = inlined_call_operand.vmem [shape: f32[1,32], index: 4, kind: input, shape index: {}]   ;;  %s2305_s5 = inlined_call_operand.hbm [shape: f32[4,8,32], index: 5, kind: output, shape index: {0}]   ;;  %s2306_s6 = inlined_call_operand.vmem [shape: f32[4,8,32], index: 6, kind: output, shape index: {1}]  }
   0x1   :  { %14 = vsyncpa [#allocation3 + $0x1], 0 }
   0x2   :  { %15 = vsyncpa [#allocation6], 0 }
   0x3   :  { %16 = vsyncpa [#allocation4], 0 }
   0x4   :  { %18 = vsyncpa [#allocation4 + $0x1], 0  ;;  %s1977_s21 = smov 0   ;;  %s1979_s22 = smov 0  }
   0x5   :  { %s1981_s23 = smov 0   ;;  %s1983_s24 = smov 0  }
   0x6 LB: > { %s1998_s25 = sadd.s32 4294967295, %s1917_s24   ;;  %s1511_s26 = sadd.s32 4294967294, %s1917_s24   ;;  %s1917_s24 = sphi %s1983_s24, %s2325_s24   ;;  %s1913_s23 = sphi %s1981_s23, %s2324_s23   ;;  %s1909_s22 = sphi %s1979_s22, %s2323_s22   ;;  %s1905_s21 = sphi %s1977_s21, %s2322_s21  }
   0x7   : > { %p44_p0 = scmp.ne.s32.totalorder %s1909_s22, %s1905_s21  ;;  %p2307_p1 = scmp.eq.s32.totalorder %s1998_s25, 0 }
   0x8   : > { %p158_p3 = scmp.eq.s32.totalorder %s1511_s26, 3  ;;  %p1512_p5 = scmp.ge.s32.totalorder %s1917_s24, 1 }
   0x9   : > { %p2007_p4 = por %p2307_p1, %p44_p0  ;;  %p191_p7 = scmp.lt.s32.totalorder %s1917_s24, 5 }
   0xa   : > { %p2012_p6 = por %p158_p3, %p44_p0  ;;  %s1919_s30 = smov [#allocation5]  }
   0xb   : > { %s2310_s27 = scalar_select %p2007_p4, 1, 0 }
   0xc   : > { %s2311_s28 = scalar_select %p2012_p6, 1, 0 }
   0xd   : > { %p2017_p8 = pnand %p1512_p5, %p191_p7  ;;  %s203_s7 = sshll.u32 %s1919_s30, 4  ;;  %s204_s7 = int_to_ptr.vmem [resolvable:$true] %s203_s7 }
   0xe   : > { %s1920_s9 = smov [#allocation7]   ;;  %s1761_s13 = scalar_lea.hbm %s2301_s1, 512 }
   0xf   : > { %s2312_s29 = scalar_select %p2017_p8, 1, 0 }
  0x10   : > { %p1671_p9 = pneg %p2017_p8  ;;  %s219_s10 = sshll.u32 %s1920_s9, 4  ;;  %s2029_s10 = int_to_ptr.vmem [resolvable:$true] %s219_s10 }
  0x11   : > { %p1762_p11 = scmp.ne.s32.totalorder %s2301_s1, %s1761_s13  ;;  %p1768_p3 = scmp.lt.u32.totalorder %s1761_s13, %s2301_s1 }
  0x12   : > { %p2025_p10 = pnand %p1671_p9, %p2307_p1 }
  0x14   : > { %p1763_p12 = pneg %p2025_p10 }
  0x16   : > { %p1764_p13 = pnand %p1763_p12, %p1762_p11 }
  0x18   : > { %p1765_p0 = pneg %p1764_p13 }
  0x1a   : > { %p1770_p5 = pnand %p1768_p3, %p1765_p0 }
  0x1c   : > { %1773 = shalt.err (!%p1770_p5)
}
  0x1d   : > { %s1774_s18 = scalar_lea.vmem %s204_s7, 512  ;;  %p1782_p2 = scmp.lt.s32.totalorder %s204_s7, %s204_s7 }
  0x1e   : > { %p1775_p7 = scmp.ne.s32.totalorder %s204_s7, %s1774_s18  ;;  %p1783_p6 = scmp.lt.s32.totalorder %s1774_s18, %s1774_s18 }
  0x20   : > { %p1777_p9 = pnand %p1775_p7, %p1763_p12  ;;  %p1784_p4 = por %p1783_p6, %p1782_p2 }
  0x22   : > { %p1778_p1 = pneg %p1777_p9 }
  0x24   : > { %p1785_p8 = pnand %p1784_p4, %p1778_p1 }
  0x26   : > { %1788 = shalt.err (!%p1785_p8)
}
  0x27   : > { %s1921_s19 = smov 128   ;;  %s1922_s20 = smov 8  }
  0x28   : > { %1674 = dma.hbm_to_vmem [thread:$0]  (!%p2025_p10), %s2301_s1, 512, %s204_s7, [#allocation6], %s1921_s19, %s1921_s19, %s1922_s20  }
  0x29   : > { %s1789_s12 = scalar_lea.hbm %s2303_s3, 512 }
  0x2a   : > { %p1790_p11 = scmp.ne.s32.totalorder %s2303_s3, %s1789_s12  ;;  %p1796_p4 = scmp.lt.u32.totalorder %s1789_s12, %s2303_s3 }
  0x2c   : > { %p1792_p1 = pnand %p1790_p11, %p1763_p12 }
  0x2e   : > { %p1793_p2 = pneg %p1792_p1 }
  0x30   : > { %p1798_p6 = pnand %p1796_p4, %p1793_p2 }
  0x32   : > { %1801 = shalt.err (!%p1798_p6)
}
  0x33   : > { %s1802_s7 = scalar_lea.vmem %s2029_s10, 512  ;;  %p1810_p3 = scmp.lt.s32.totalorder %s2029_s10, %s2029_s10 }
  0x34   : > { %p1803_p8 = scmp.ne.s32.totalorder %s2029_s10, %s1802_s7  ;;  %p1811_p5 = scmp.lt.s32.totalorder %s1802_s7, %s1802_s7 }
  0x36   : > { %p1805_p13 = pnand %p1803_p8, %p1763_p12  ;;  %p1812_p7 = por %p1811_p5, %p1810_p3 }
  0x38   : > { %p1806_p0 = pneg %p1805_p13 }
  0x3a   : > { %p1813_p9 = pnand %p1812_p7, %p1806_p0 }
  0x3c   : > { %1816 = shalt.err (!%p1813_p9)
}
  0x3d   : > { %1677 = dma.hbm_to_vmem [thread:$0]  (!%p2025_p10), %s2303_s3, 512, %s2029_s10, [#allocation6], %s1921_s19, %s1921_s19, %s1922_s20  }
  0x3e   : > { %s2079_s26 = sadd.s32 1, %s1917_s24   ;;  %s31_s8 = sadd.s32 1, %s1913_s23 }
  0x3f   : > { %s28_s30 = ssub.s32 %s1917_s24, %s2079_s26  ;;  %p38_p12 = scmp.ne.s32.totalorder %s1913_s23, %s1909_s22 }
  0x40   : > { %p29_p11 = scmp.eq.s32.totalorder %s28_s30, 0  ;;  %p39_p1 = scmp.eq.s32.totalorder %s1917_s24, 0 }
  0x41   : > { %p2314_p2 = scmp.eq.s32.totalorder %s1998_s25, 3  ;;  %p1688_p6 = scmp.lt.s32.totalorder %s1917_s24, 4 }
  0x42   : > { %s2095_s11 = scalar_select %p29_p11, %s1913_s23, %s31_s8  }
  0x43   : > { %p2089_p4 = por %p2314_p2, %p38_p12  ;;  %p40_p8 = por %p39_p1, %p38_p12 }
  0x44   : > { %s236_s12 = sand.u32 1, %s1913_s23   ;;  %s1517_s10 = sshll.u32 %s1917_s24, 7 }
  0x45   : > { %s1516_s13 = sshll.u32 %s236_s12, 3  ;;  %s2102_s14 = scalar_lea.hbm %s2300_s0, %s1517_s10 }
  0x46   : > { %s240_s15 = scalar_lea.vmem [#allocation2], %s1516_s13  ;;  %p2106_p10 = pnand %p1688_p6, %p40_p8 }
  0x47   : > { %s247_s16 = sshll.u32 %s240_s15, 4  ;;  %s237_s17 = scalar_lea.sflag [#allocation3], %s236_s12  ;;  %s2104_s16 = int_to_ptr.vmem [resolvable:$true] %s247_s16 }
  0x48   : > { %s1817_s18 = scalar_lea.hbm %s2102_s14, 128  ;;  %p1819_p0 = pneg %p2106_p10 }
  0x49   : > { %p1818_p13 = scmp.ne.s32.totalorder %s2102_s14, %s1817_s18  ;;  %s1822_s13 = scalar_lea.hbm %s2300_s0, 512 }
  0x4a   : > { %p1823_p7 = scmp.lt.u32.totalorder %s2102_s14, %s2300_s0  ;;  %p1824_p9 = scmp.lt.u32.totalorder %s1822_s13, %s1817_s18 }
  0x4b   : > { %p1820_p3 = pnand %p1819_p0, %p1818_p13  ;;  %p1826_p11 = scmp.lt.u32.totalorder %s1817_s18, %s2102_s14 }
  0x4c   : > { %p1825_p12 = por %p1824_p9, %p1823_p7 }
  0x4d   : > { %p1821_p5 = pneg %p1820_p3 }
  0x4e   : > { %p1827_p1 = por %p1826_p11, %p1825_p12 }
  0x50   : > { %p1828_p2 = pnand %p1827_p1, %p1821_p5 }
  0x52   : > { %1831 = shalt.err (!%p1828_p2)
}
  0x53   : > { %s1832_s12 = scalar_lea.vmem %s2104_s16, 128  ;;  %s1923_s20 = smov [#allocation2]  }
  0x54   : > { %p1833_p6 = scmp.ne.s32.totalorder %s2104_s16, %s1832_s12  ;;  %s1837_s15 = sshll.u32 %s1923_s20, 4  ;;  %s1838_s15 = int_to_ptr.vmem [resolvable:$false] %s1837_s15 }
  0x55   : > { %s1839_s8 = scalar_lea.vmem %s1838_s15, 256  ;;  %p1840_p3 = scmp.lt.s32.totalorder %s2104_s16, %s1838_s15 }
  0x56   : > { %p1835_p8 = pnand %p1833_p6, %p1819_p0  ;;  %p1841_p7 = scmp.lt.s32.totalorder %s1839_s8, %s1832_s12 }
  0x58   : > { %p1836_p13 = pneg %p1835_p8  ;;  %p1842_p9 = por %p1841_p7, %p1840_p3 }
  0x5a   : > { %p1843_p12 = pnand %p1842_p9, %p1836_p13 }
  0x5c   : > { %1846 = shalt.err (!%p1843_p12)
}
  0x5d   : > { %1681 = dma.hbm_to_vmem [thread:$0]  (!%p2106_p10), %s2102_s14, 128, %s2104_s16, %s237_s17  }
  0x5e   : > { %p2317_p5 = scmp.ne.s32.totalorder %s2312_s29, 0 }
  0x5f   : > { %s2138_s18 = sand.u32 (!%p2317_p5), 1, %s1909_s22   ;;  %p2318_p0 = scmp.ne.s32.totalorder (!%p2317_p5), %s2310_s27, 0 }
  0x60   : > { %256 = sbr.rel (%p2317_p5) target bundleno = 2691 (0xa83), region = 40  ;;  %s1519_s30 = sshll.u32 (!%p2317_p5), %s2138_s18, 3 }
  0x61   : > { %s259_s13 = scalar_lea.sflag (!%p2317_p5), [#allocation3], %s2138_s18  ;;  %s262_s10 = scalar_lea.vmem (!%p2317_p5), [#allocation2], %s1519_s30 }
  0x67   : > { %1892 = dma.done.wait (%p2318_p0), %s259_s13, 128  }
  0x68   : > { %1894 = vsyncadd (%p2318_p0), %s259_s13, 4294967168  ;;  %p2319_p10 = scmp.eq.s32.totalorder %s1998_s25, 0 }
  0x6a   : > { %1896 = dma.done.wait (%p2319_p10), [#allocation6], 1024   ;;  %p2320_p11 = pmov %p2319_p10 }
  0x6b   : > { %v1924_v0 = vmov 0.0|0.0   ;;  %vm1925_vm0 = vmmov 0   ;;  %v1926_v1 = vmov 0.0   ;;  %v308_v2 = vld [vmem:[#allocation5] sm:$0xff]  ;;  %v309_v3 = vld [vmem:[#allocation5 + $0x8] sm:$0xff]  ;;  %v310_v4 = vld [vmem:[#allocation5 + $0x10] sm:$0xff] }
  0x6c   : > { %1898 = vsyncadd (%p2320_p11), [#allocation6], 4294966272  ;;  %1647 = vmatprep.subr.bf16.mxu0 %v1924_v0  ;;  %1584 = vmatprep.mubr.msk.f32.mxu0 %vm1925_vm0, %v1926_v1  ;;  %v1648_v5 = vpack.c.bf16 %v309_v3, %v308_v2  ;;  %v311_v6 = vld [vmem:[#allocation5 + $0x18] sm:$0xff]  ;;  %vm319_vm1 = vcmask 261120   ;;  %v1524_v9 = vld [vmem:[%s2302_s2] ss:$0 sm:$0xff] }
  0x6d   : > { %1587 = vmatprep.subr.mxu1 %v1926_v1  ;;  %1589 = vmatprep.mubr.msk.f32.mxu1 %vm1925_vm0, %v1926_v1  ;;  %v1651_v7 = vpack.c.bf16 %v311_v6, %v310_v4  ;;  %v307_v8 = vld [vmem:[%s262_s10] sm:$0xff]  ;;  %s1927_s14 = smov 96   ;;  %vm407_vm2 = vcmask 64512   ;;  %s1928_s16 = smov 64   ;;  %v393_v26 = vld [vmem:[#allocation7] sm:$0xff]  ;;  %v394_v61 = vld [vmem:[#allocation7 + $0x8] sm:$0xff] }
  0x6e   : > { %1649 = vmatpush3.bf16.msra.mxu0 %v1648_v5  ;;  %s1929_s7 = smov 88   ;;  %s1930_s17 = smov 120   ;;  %v395_v4 = vld [vmem:[#allocation7 + $0x10] sm:$0xff]  ;;  %vm737_vm3 = vcmask 130112   ;;  %vm981_vm4 = vcmask 195712   ;;  %vm1225_vm5 = vcmask 261312  }
  0x6f   : > { %1650 = vmatprep.subr.bf16.mxu0 %v1924_v0  ;;  %s1931_s19 = smov 80   ;;  %s1932_s12 = smov 112  }
  0x70   : > { %p303_p1 = scmp.lt.s32.totalorder %s1998_s25, 3  ;;  %s1933_s27 = smov 48  }
  0x71   : > { %s1934_s29 = smov 72   ;;  %s1544_s8 = sshll.u32 %s1998_s25, 7 }
  0x72   : > { %1652 = vmatpush3.bf16.msra.mxu0 %v1651_v7  ;;  %s304_s20 = scalar_select %p303_p1, %s1998_s25, 3 }
  0x73   : > { %1607 = vmatprep.subr.mxu0 %v1926_v1  ;;  %s296_s13 = scalar_lea.vmem [#allocation8], %s1519_s30  ;;  %s1378_s25 = scalar_lea.sflag [#allocation4], %s2138_s18 }
  0x74   : > { %s1523_s15 = sshll.u32 %s304_s20, 3 }
  0x75   : > { %1585 = vmatmul.mubr.msk.f32.vlgmr.msra.gmra.mrb[0].mxu0 %vm319_vm1, %v307_v8  ;;  %s2186_s10 = scalar_lea.vmem %s2306_s6, %s1523_s15 }
  0x76   : > { %1609 = vmatprep.mubr.msk.f32.mxu0 %vm1925_vm0, %v1926_v1 }
 0x148   : > { %v389_v10 = vpop.f32.mrb[0].mxu0 }
 0x149   : > { %v2164_v11 = vadd.f32 %v1524_v9, %v389_v10  ;;  %v1586_v12 = vpop.f32.mrb[1].mxu0 }
 0x14b   : > { %405 = vrot.lane.b32.xlu0 %v2164_v11, %s1927_s14  ;;  %s1935_s14 = smov 104  }
 0x1bd   : > { %v406_v13 = vpop.permute.xlu0 %405 }
 0x1be   : > { %1588 = vmatpush3.xpose.msk.msra.mxu1 %vm407_vm2, %v406_v13 }
 0x1bf   : > { %1592 = vmatprep.subr.mxu1 %v1926_v1 }
 0x1c1   : > { %1590 = vmatmul.mubr.msk.f32.vlgmr.msra.gmra.mrb[0].mxu1 %vm407_vm2, %v2164_v11 }
 0x1c2   : > { %1594 = vmatprep.mubr.msk.f32.mxu1 %vm1925_vm0, %v1926_v1 }
 0x294   : > { %v478_v14 = vpop.f32.mrb[0].mxu1 }
 0x295   : > { %v1591_v15 = vpop.f32.mrb[1].mxu1  ;;  %v482_v16 = vsel %vm407_vm2, %v478_v14, -inf }
 0x296   : > { %483 = vmax.xlane.f32.xlu0 %v482_v16 }
 0x323   : > { %v484_v17 = vpop.xlane.xlu0 %483 }
 0x324   : > { %v485_v18 = vsub.f32 %v478_v14, %v484_v17 }
 0x326   : > { %v486_v19 = vmul.f32 1.442695, %v485_v18  ;;  %v396_v18 = vld [vmem:[#allocation7 + $0x18] sm:$0xff] }
 0x328   : > { %1745 = vpow2.f32 %v486_v19 }
 0x332   : > { %v1746_v20 = vpop.eup %1745 }
 0x333   : > { %v488_v21 = vsel %vm407_vm2, %v1746_v20, 0.0 }
 0x334   : > { %489 = vadd.xlane.f32.xlu1 %v488_v21 }
 0x345   : > { %494 = vrot.lane.b32.xlu1 %v2164_v11, %s1928_s16  ;;  %s1936_s16 = smov 56  }
 0x349   : > { %646 = vrot.lane.b32.xlu1 %v2164_v11, %s1929_s7  ;;  %s1937_s7 = smov 40  }
 0x34d   : > { %644 = vrot.lane.b32.xlu1 %v2164_v11, %s1930_s17  ;;  %s1938_s17 = smov 8  }
 0x351   : > { %890 = vrot.lane.b32.xlu1 %v2164_v11, %s1931_s19  ;;  %s1939_s19 = smov 16  }
 0x355   : > { %888 = vrot.lane.b32.xlu1 %v2164_v11, %s1932_s12  ;;  %s1940_s12 = smov 24  }
 0x3c1   : > { %v490_v22 = vpop.xlane.xlu1 %489 }
 0x3c2   : > { %1747 = vrcp.f32 %v490_v22  ;;  %v1526_v22 = vld [vmem:[%s2304_s4] ss:$0 sm:$0xff] }
 0x3c5   : > { %v495_v23 = vpop.permute.xlu1 %494 }
 0x3c6   : > { %1593 = vmatpush3.msra.mxu1 %v495_v23 }
 0x3c7   : > { %1597 = vmatprep.subr.mxu1 %v1926_v1 }
 0x3c9   : > { %v647_v27 = vpop.permute.xlu1 %646 }
 0x3cc   : > { %v1748_v24 = vpop.eup %1747 }
 0x3cd   : > { %v492_v25 = vmul.f32 %v1748_v24, %v1746_v20  ;;  %v645_v28 = vpop.permute.xlu1 %644 }
 0x3cf   : > { %1595 = vmatmul.mubr.msk.f32.vlgmr.msra.gmra.mrb[2].mxu1 %vm407_vm2, %v492_v25  ;;  %493 = vst.msk [vmem:[%s2186_s10] sm:$0xff] %vm407_vm2, %v492_v25 }
 0x3d0   : > { %1598 = vmatpush3.msra.mxu1 %v393_v26  ;;  %1599 = vmatprep.mubr.msk.f32.mxu1 %vm1925_vm0, %v1926_v1 }
 0x3d1   : > { %1602 = vmatprep.subr.mxu1 %v1926_v1  ;;  %v891_v31 = vpop.permute.xlu1 %890 }
 0x3d5   : > { %v889_v32 = vpop.permute.xlu1 %888 }
 0x4a2   : > { %v566_v29 = vpop.f32.mrb[2].mxu1 }
 0x4a3   : > { %v1596_v30 = vpop.f32.mrb[3].mxu1  ;;  %1600 = vmatmul.mubr.msk.f32.vlgmr.msra.gmra.mrb[4].mxu1 %vm407_vm2, %v566_v29 }
 0x4a4   : > { %1603 = vmatpush3.xpose.msk.msra.mxu1 %vm407_vm2, %v647_v27  ;;  %1604 = vmatprep.mubr.msk.f32.mxu1 %vm1925_vm0, %v1926_v1 }
 0x4a5   : > { %1617 = vmatprep.subr.mxu1 %v1926_v1 }
 0x4a7   : > { %1605 = vmatmul.mubr.msk.f32.vlgmr.msra.gmra.mrb[6].mxu1 %vm407_vm2, %v645_v28 }
 0x4a8   : > { %1618 = vmatpush3.xpose.msk.msra.mxu1 %vm407_vm2, %v891_v31  ;;  %1619 = vmatprep.mubr.msk.f32.mxu1 %vm1925_vm0, %v1926_v1 }
 0x4a9   : > { %1622 = vmatprep.subr.mxu1 %v1926_v1 }
 0x4ab   : > { %1620 = vmatmul.mubr.msk.f32.vlgmr.msra.gmra.mrb[8].mxu1 %vm407_vm2, %v889_v32 }
 0x4ac   : > { %1624 = vmatprep.mubr.msk.f32.mxu1 %vm1925_vm0, %v1926_v1 }
 0x576   : > { %v2207_v33 = vpop.f32.mrb[4].mxu1 }
 0x577   : > { %v1601_v34 = vpop.f32.mrb[5].mxu1  ;;  %v643_v23 = vadd.f32 %v1526_v22, %v2207_v33 }
 0x57a   : > { %v718_v35 = vpop.f32.mrb[6].mxu1 }
 0x57b   : > { %v1606_v36 = vpop.f32.mrb[7].mxu1  ;;  %v722_v40 = vsel %vm407_vm2, %v718_v35, -inf }
 0x57e   : > { %v962_v37 = vpop.f32.mrb[8].mxu1 }
 0x57f   : > { %v1621_v38 = vpop.f32.mrb[9].mxu1  ;;  %v966_v39 = vsel %vm407_vm2, %v962_v37, -inf }
 0x580   : > { %967 = vmax.xlane.f32.xlu0 %v966_v39 }
 0x596   : > { %983 = vrot.lane.b32.xlu0 %v2164_v11, %s1933_s27  ;;  %s1395_s27 = sshll.u32 %s296_s13, 4  ;;  %s2258_s27 = int_to_ptr.vmem [resolvable:$true] %s1395_s27 }
 0x597   : > { %s1847_s30 = scalar_lea.vmem %s2258_s27, 128 }
 0x598   : > { %p1848_p2 = scmp.ne.s32.totalorder %s2258_s27, %s1847_s30 }
 0x59a   : > { %1134 = vrot.lane.b32.xlu0 %v2164_v11, %s1934_s29  ;;  %p1849_p6 = pnand %p1848_p2, %p2089_p4 }
 0x59c   : > { %p1850_p8 = pneg %p1849_p6 }
 0x59e   : > { %1132 = vrot.lane.b32.xlu0 %v2164_v11, %s1935_s14  ;;  %s2256_s14 = scalar_lea.hbm %s2305_s5, %s1544_s8 }
 0x5bd   : > { %723 = vmax.xlane.f32.xlu0 %v722_v40 }
 0x60d   : > { %v968_v41 = vpop.xlane.xlu0 %967 }
 0x60e   : > { %v969_v42 = vsub.f32 %v962_v37, %v968_v41 }
 0x610   : > { %v970_v43 = vmul.f32 1.442695, %v969_v42 }
 0x611   : > { %v984_v44 = vpop.permute.xlu0 %983 }
 0x612   : > { %1749 = vpow2.f32 %v970_v43  ;;  %1623 = vmatpush3.msra.mxu1 %v984_v44 }
 0x613   : > { %1632 = vmatprep.subr.mxu1 %v1926_v1 }
 0x615   : > { %v1135_v47 = vpop.permute.xlu0 %1134 }
 0x619   : > { %v1133_v48 = vpop.permute.xlu0 %1132 }
 0x61c   : > { %v1750_v45 = vpop.eup %1749 }
 0x61d   : > { %v972_v46 = vsel %vm407_vm2, %v1750_v45, 0.0 }
 0x61e   : > { %973 = vadd.xlane.f32.xlu1 %v972_v46 }
 0x64a   : > { %v724_v49 = vpop.xlane.xlu0 %723 }
 0x64b   : > { %v725_v50 = vsub.f32 %v718_v35, %v724_v49 }
 0x64d   : > { %v726_v51 = vmul.f32 1.442695, %v725_v50 }
 0x64f   : > { %1751 = vpow2.f32 %v726_v51 }
 0x659   : > { %v1752_v52 = vpop.eup %1751 }
 0x65a   : > { %v728_v53 = vsel %vm407_vm2, %v1752_v52, 0.0 }
 0x65b   : > { %729 = vadd.xlane.f32.xlu1 %v728_v53 }
 0x66c   : > { %739 = vrot.lane.b32.xlu1 %v2164_v11, %s1936_s16  ;;  %s1941_s16 = smov [#allocation8]  }
 0x6ab   : > { %v974_v54 = vpop.xlane.xlu1 %973 }
 0x6ac   : > { %1753 = vrcp.f32 %v974_v54 }
 0x6b6   : > { %v1754_v55 = vpop.eup %1753 }
 0x6b7   : > { %v976_v56 = vmul.f32 %v1754_v55, %v1750_v45 }
 0x6b9   : > { %1625 = vmatmul.mubr.msk.f32.vlgmr.msra.gmra.mrb[10].mxu1 %vm407_vm2, %v976_v56 }
 0x6ba   : > { %1633 = vmatpush3.xpose.msk.msra.mxu1 %vm407_vm2, %v1135_v47  ;;  %1634 = vmatprep.mubr.msk.f32.mxu1 %vm1925_vm0, %v1926_v1 }
 0x6bd   : > { %1635 = vmatmul.mubr.msk.f32.vlgmr.msra.gmra.mrb[12].mxu1 %vm407_vm2, %v1133_v48 }
 0x6e8   : > { %v730_v57 = vpop.xlane.xlu1 %729 }
 0x6e9   : > { %1755 = vrcp.f32 %v730_v57 }
 0x6ec   : > { %v740_v58 = vpop.permute.xlu1 %739 }
 0x6ed   : > { %1608 = vmatpush3.msra.mxu0 %v740_v58 }
 0x6ee   : > { %1612 = vmatprep.subr.mxu0 %v1926_v1 }
 0x6f3   : > { %v1756_v59 = vpop.eup %1755 }
 0x6f4   : > { %v732_v60 = vmul.f32 %v1756_v59, %v1752_v52 }
 0x6f6   : > { %1610 = vmatmul.mubr.msk.f32.vlgmr.msra.gmra.mrb[2].mxu0 %vm407_vm2, %v732_v60 }
 0x6f7   : > { %1614 = vmatprep.mubr.msk.f32.mxu0 %vm1925_vm0, %v1926_v1  ;;  %1613 = vmatpush3.msra.mxu0 %v394_v61 }
 0x6f8   : > { %1627 = vmatprep.subr.mxu0 %v1926_v1 }
 0x78c   : > { %v1054_v62 = vpop.f32.mrb[10].mxu1 }
 0x78d   : > { %v1626_v63 = vpop.f32.mrb[11].mxu1 }
 0x790   : > { %v1206_v0 = vpop.f32.mrb[12].mxu1 }
 0x791   : > { %v1636_v2 = vpop.f32.mrb[13].mxu1  ;;  %v1210_v3 = vsel %vm407_vm2, %v1206_v0, -inf }
 0x792   : > { %1211 = vmax.xlane.f32.xlu1 %v1210_v3 }
 0x7c9   : > { %v810_v5 = vpop.f32.mrb[2].mxu0 }
 0x7ca   : > { %v1611_v6 = vpop.f32.mrb[3].mxu0  ;;  %1615 = vmatmul.mubr.msk.f32.vlgmr.msra.gmra.mrb[4].mxu0 %vm407_vm2, %v810_v5 }
 0x7cb   : > { %1628 = vmatpush3.msra.mxu0 %v395_v4  ;;  %1629 = vmatprep.mubr.msk.f32.mxu0 %vm1925_vm0, %v1926_v1 }
 0x7cc   : > { %1637 = vmatprep.subr.mxu0 %v1926_v1 }
 0x7d2   : > { %1630 = vmatmul.mubr.msk.f32.vlgmr.msra.gmra.mrb[4].mxu0 %vm407_vm2, %v1054_v62 }
 0x7d3   : > { %1639 = vmatprep.mubr.msk.f32.mxu0 %vm1925_vm0, %v1926_v1 }
 0x81f   : > { %v1212_v7 = vpop.xlane.xlu1 %1211 }
 0x820   : > { %v1213_v8 = vsub.f32 %v1206_v0, %v1212_v7 }
 0x822   : > { %v1214_v9 = vmul.f32 1.442695, %v1213_v8 }
 0x824   : > { %1757 = vpow2.f32 %v1214_v9 }
 0x82e   : > { %v1758_v10 = vpop.eup %1757 }
 0x82f   : > { %v1216_v12 = vsel %vm407_vm2, %v1758_v10, 0.0 }
 0x830   : > { %1217 = vadd.xlane.f32.xlu0 %v1216_v12 }
 0x846   : > { %1227 = vrot.lane.b32.xlu0 %v2164_v11, %s1937_s7  ;;  %s1851_s7 = sshll.u32 %s1941_s16, 4  ;;  %s1852_s7 = int_to_ptr.vmem [resolvable:$false] %s1851_s7 }
 0x847   : > { %p1854_p13 = scmp.lt.s32.totalorder %s2258_s27, %s1852_s7 }
 0x84a   : > { %734 = vrot.lane.b32.xlu0 %v732_v60, %s1938_s17  ;;  %s1853_s17 = scalar_lea.vmem %s1852_s7, 256 }
 0x84b   : > { %p1855_p3 = scmp.lt.s32.totalorder %s1853_s17, %s1847_s30 }
 0x84d   : > { %p1856_p7 = por %p1855_p3, %p1854_p13 }
 0x84e   : > { %978 = vrot.lane.b32.xlu0 %v976_v56, %s1939_s19 }
 0x84f   : > { %p1857_p9 = pnand %p1856_p7, %p1850_p8 }
 0x8bd   : > { %v1218_v13 = vpop.xlane.xlu0 %1217 }
 0x8be   : > { %1759 = vrcp.f32 %v1218_v13 }
 0x8c1   : > { %v1228_v14 = vpop.permute.xlu0 %1227 }
 0x8c2   : > { %1638 = vmatpush3.msra.mxu0 %v1228_v14 }
 0x8c3   : > { %1642 = vmatprep.subr.mxu0 %v1926_v1 }
 0x8c5   : > { %v735_v15 = vpop.permute.xlu0 %734 }
 0x8c6   : > { %738 = vst.msk [vmem:[%s2186_s10] sm:$0xff] %vm737_vm3, %v735_v15 }
 0x8c8   : > { %v1760_v16 = vpop.eup %1759 }
 0x8c9   : > { %v979_v17 = vpop.permute.xlu0 %978  ;;  %v1220_v11 = vmul.f32 %v1760_v16, %v1758_v10 }
 0x8ca   : > { %982 = vst.msk [vmem:[%s2186_s10] sm:$0xff] %vm981_vm4, %v979_v17 }
 0x8cb   : > { %1222 = vrot.lane.b32.xlu1 %v1220_v11, %s1940_s12  ;;  %1640 = vmatmul.mubr.msk.f32.vlgmr.msra.gmra.mrb[6].mxu0 %vm407_vm2, %v1220_v11 }
 0x8cc   : > { %1643 = vmatpush3.msra.mxu0 %v396_v18  ;;  %1644 = vmatprep.mubr.msk.f32.mxu0 %vm1925_vm0, %v1926_v1 }
 0x93d   : > { %v1223_v19 = vpop.permute.xlu1 %1222 }
 0x93e   : > { %1226 = vst.msk [vmem:[%s2186_s10] sm:$0xff] %vm1225_vm5, %v1223_v19 }
 0x99e   : > { %v1298_v20 = vpop.f32.mrb[6].mxu0 }
 0x99f   : > { %v1641_v21 = vpop.f32.mrb[7].mxu0  ;;  %1645 = vmatmul.mubr.msk.f32.vlgmr.msra.gmra.mrb[4].mxu0 %vm407_vm2, %v1298_v20 }
 0xa72   : > { %v1371_v1 = vpop.f32.mrb[4].mxu0 }
 0xa73   : > { %v1654_v24 = vadd.f32 %v1371_v1, %v643_v23  ;;  %v1646_v25 = vpop.f32.mrb[5].mxu0 }
 0xa75   : > { %1376 = vst.msk [vmem:[%s296_s13] sm:$0xff] %vm319_vm1, %v1654_v24 }
 0xa76   : > { %1860 = shalt.err (!%p1857_p9)
}
 0xa77   : > { %s1861_s18 = scalar_lea.hbm %s2256_s14, 128  ;;  %s1865_s20 = scalar_lea.hbm %s2305_s5, 512 }
 0xa78   : > { %p1862_p12 = scmp.ne.s32.totalorder %s2256_s14, %s1861_s18  ;;  %p1866_p10 = scmp.lt.u32.totalorder %s2256_s14, %s2305_s5 }
 0xa79   : > { %p1867_p11 = scmp.lt.u32.totalorder %s1865_s20, %s1861_s18  ;;  %p1869_p2 = scmp.lt.u32.totalorder %s1861_s18, %s2256_s14 }
 0xa7a   : > { %p1863_p5 = pnand %p1862_p12, %p2089_p4 }
 0xa7b   : > { %p1868_p1 = por %p1867_p11, %p1866_p10 }
 0xa7c   : > { %p1864_p0 = pneg %p1863_p5 }
 0xa7d   : > { %p1870_p6 = por %p1869_p2, %p1868_p1 }
 0xa7f   : > { %p1871_p8 = pnand %p1870_p6, %p1864_p0 }
 0xa81   : > { %1874 = shalt.err (!%p1871_p8)
}
 0xa82   : > { %1669 = dma.vmem_to_hbm [thread:$0]  (%p2089_p4), %s2258_s27, 128, %s2256_s14, %s1378_s25  }
 0xa83 PF: > { %p1691_p13 = scmp.ge.s32.totalorder %s1917_s24, 2  ;;  %s1410_s13 = sand.u32 1, %s1905_s21  }
 0xa84   : > { %p2321_p3 = scmp.ne.s32.totalorder %s2311_s28, 0  ;;  %s1411_s29 = scalar_lea.sflag [#allocation4], %s1410_s13 }
 0xa86   : > { %p1683_p7 = pnand %p1691_p13, %p2321_p3 }
 0xa88   : > { %1900 = dma.done.wait (!%p1683_p7), %s1411_s29, 128  }
 0xa89   : > { %1902 = vsyncadd (!%p1683_p7), %s1411_s29, 4294967168  ;;  %p21_p9 = scmp.ge.s32.totalorder %s2079_s26, 6   ;;  %s2322_s21 = smov %s1909_s22 }
 0xa8a   : > { %s2323_s22 = smov %s1913_s23  ;;  %s2324_s23 = smov %s2095_s11 }
 0xa8b   : > { %s2325_s24 = smov %s2079_s26  ;;  %23 = sbr.rel (!%p21_p9) target bundleno = 6 (0x6), region = 105 }
 0xa92   :  { %1423 = vsyncpa [#allocation3], 1 }
 0xa93   :  { %1425 = vsyncpa [#allocation3 + $0x1], 1 }
 0xa94   :  { %1426 = vsyncpa [#allocation6], 1 }
 0xa95   :  { %1427 = vsyncpa [#allocation4], 1 }
 0xa96   :  { %1429 = vsyncpa [#allocation4 + $0x1], 1 }

</bundles_post_ra>
